<compile_context>
chip_gen: v7x
topology: tpu7x:2x2x1
jax: 0.10.0
libtpu: 0.0.40
codegen_flags: <defaults>
</compile_context>

<pallas_src>
import functools

import numpy as np
import jax
import jax.numpy as jnp
from jax.experimental import pallas as pl
from jax.experimental.pallas import tpu as pltpu

EPS = 1e-3
KH = KW = 3


def _round_up(x, m):
    return (x + m - 1) // m * m


def _bn_relu_conv_kernel(xp_ref, mask_ref, gamma_ref, beta_ref, w_ref,
                         o_ref, act_ref, *, n, h, w, c_in, c_out, tm, m_true):
    # xp_ref:    (R, C)      zero-padded NHWC input, rows = (n, i, j) flattened
    # mask_ref:  (R, 1)      1.0 at interior pixels, 0.0 at conv-pad / tail rows
    # gamma/beta:(1, C)
    # w_ref:     (KH*KW*C, C_OUT)   tap-major, channel-minor
    # o_ref:     (N*TM, C_OUT)      widened output rows (h, j), j in [0, W+2)
    # act_ref:   (R, C)      VMEM scratch holding BN+ReLU activation
    hp, wp = h + 2, w + 2
    xp = xp_ref[...]
    msk = mask_ref[...]
    inv_m = 1.0 / m_true

    # Training-mode batch statistics (pad rows are zero -> sums are exact).
    mean = jnp.sum(xp, axis=0, keepdims=True) * inv_m              # (1, C)
    d = xp - mean
    var = jnp.sum(d * d * msk, axis=0, keepdims=True) * inv_m      # biased var
    scale = gamma_ref[...] * jax.lax.rsqrt(var + EPS)              # (1, C)
    shift = beta_ref[...] - mean * scale                           # (1, C)

    # BN + ReLU on the compact tensor; the row mask restores conv zero-padding.
    act_ref[...] = jnp.maximum(xp * scale + shift, 0.0) * msk

    # Direct 3x3 SAME conv: 9 shifted (TM, C) x (C, C_OUT) matmuls, f32 accum.
    for img in range(n):
        base = img * hp * wp
        acc = jnp.zeros((tm, c_out), jnp.float32)
        for t in range(KH * KW):
            kh, kw = t // KW, t % KW
            start = base + kh * wp + kw                  # static Python int
            patch = act_ref[start:start + tm, :]         # (TM, C)
            wt = w_ref[t * c_in:(t + 1) * c_in, :]       # (C, C_OUT)
            acc = acc + jnp.dot(patch, wt, preferred_element_type=jnp.float32)
        o_ref[img * tm:(img + 1) * tm, :] = acc


@jax.jit
def bn_relu_conv(x_nchw, gamma, beta, weight_oihw):
    """Forward of BatchNorm2d(C, eps=1e-3) -> ReLU -> Conv2d(C, C_OUT, 3, pad=1)."""
    n, c, h, w = x_nchw.shape
    c_out = weight_oihw.shape[0]
    hp, wp = h + 2, w + 2
    m_true = n * h * w

    # Widened per-image output rows (h, j) with j in [0, wp); pad to mult of 8.
    tm = _round_up(h * wp, 8)
    # Flattened padded-input rows; the last tap slice must stay in bounds.
    r = _round_up((n - 1) * hp * wp + 2 * wp + 2 + tm, 8)

    # NCHW -> NHWC (module contract is NCHW I/O), spatial zero pad, flatten.
    x_nhwc = jnp.transpose(x_nchw, (0, 2, 3, 1)).astype(jnp.float32)
    xp = jnp.pad(x_nhwc, ((0, 0), (1, 1), (1, 1), (0, 0)))          # (N,Hp,Wp,C)
    xp_flat = xp.reshape(n * hp * wp, c)
    xp_flat = jnp.pad(xp_flat, ((0, r - n * hp * wp), (0, 0)))      # (R, C)

    # Tiny compile-time-constant validity mask (1 per interior pixel row).
    m3 = np.zeros((n, hp, wp), np.float32)
    m3[:, 1:1 + h, 1:1 + w] = 1.0
    mrow = np.zeros((r, 1), np.float32)
    mrow[:n * hp * wp, 0] = m3.reshape(-1)
    mask = jnp.asarray(mrow)

    # (O, I, KH, KW) -> (KH, KW, I, O) -> (KH*KW*I, O)
    w2 = jnp.transpose(weight_oihw, (2, 3, 1, 0)).reshape(KH * KW * c, c_out)
    w2 = w2.astype(jnp.float32)
    gamma2 = gamma.reshape(1, c).astype(jnp.float32)
    beta2 = beta.reshape(1, c).astype(jnp.float32)

    kernel = functools.partial(
        _bn_relu_conv_kernel, n=n, h=h, w=w, c_in=c, c_out=c_out,
        tm=tm, m_true=float(m_true))

    out2 = pl.pallas_call(
        kernel,
        out_shape=jax.ShapeDtypeStruct((n * tm, c_out), jnp.float32),
        in_specs=[pl.BlockSpec(memory_space=pltpu.MemorySpace.VMEM)] * 5,
        out_specs=pl.BlockSpec(memory_space=pltpu.MemorySpace.VMEM),
        scratch_shapes=[pltpu.VMEM((r, c), jnp.float32)],
    )(xp_flat, mask, gamma2, beta2, w2)

    # Drop junk columns (j >= W) and pad rows, return NCHW.
    out = out2.reshape(n, tm, c_out)[:, :h * wp, :]
    out = out.reshape(n, h, wp, c_out)[:, :, :w, :]                 # (N,H,W,O)
    return jnp.transpose(out, (0, 3, 1, 2))                         # (N,O,H,W)


def _reference(x_nchw, gamma, beta, weight_oihw):
    """Pure-JAX reference: training-mode BN + ReLU + conv (NCHW)."""
    x = x_nchw.astype(jnp.float32)
    mean = jnp.mean(x, axis=(0, 2, 3), keepdims=True)
    var = jnp.mean(jnp.square(x - mean), axis=(0, 2, 3), keepdims=True)
    xn = (x - mean) * jax.lax.rsqrt(var + EPS)
    act = jnp.maximum(xn * gamma.reshape(1, -1, 1, 1) + beta.reshape(1, -1, 1, 1), 0.0)
    return jax.lax.conv_general_dilated(
        act, weight_oihw, window_strides=(1, 1), padding=((1, 1), (1, 1)),
        dimension_numbers=("NCHW", "OIHW", "NCHW"))


if __name__ == "__main__":
    C_IN, C_OUT = 32, 128
    key = jax.random.PRNGKey(0)
    kx, kg, kb, kw = jax.random.split(key, 4)
    # Shapes implied by the module: x (1, 32, 7, 7)
    x = jax.random.normal(kx, (1, C_IN, 7, 7), dtype=jnp.float32)
    gamma = 1.0 + 0.1 * jax.random.normal(kg, (C_IN,), dtype=jnp.float32)
    beta = 0.1 * jax.random.normal(kb, (C_IN,), dtype=jnp.float32)
    weight = 0.1 * jax.random.normal(kw, (C_OUT, C_IN, KH, KW), dtype=jnp.float32)

    out = jax.block_until_ready(bn_relu_conv(x, gamma, beta, weight))
    ref = jax.block_until_ready(_reference(x, gamma, beta, weight))

    assert out.shape == (1, C_OUT, 7, 7), out.shape
    err = float(jnp.max(jnp.abs(out - ref)))
    assert jnp.allclose(out, ref, atol=1e-3, rtol=1e-3), err
    print("KERNEL_OK")
</pallas_src>

<mosaic_0001>
module attributes {stable_mosaic.version = 11 : i64} {
  func.func @_bn_relu_conv_kernel(%arg0: memref<88x32xf32, #tpu.memory_space<vmem>>, %arg1: memref<88x1xf32, #tpu.memory_space<vmem>>, %arg2: memref<1x32xf32, #tpu.memory_space<vmem>>, %arg3: memref<1x32xf32, #tpu.memory_space<vmem>>, %arg4: memref<288x128xf32, #tpu.memory_space<vmem>>, %arg5: memref<64x128xf32, #tpu.memory_space<vmem>>, %arg6: memref<88x32xf32, #tpu.memory_space<vmem>>) attributes {dimension_semantics = [], scalar_prefetch = 0 : i64, scratch_operands = 1 : i64, tpu.core_type = #tpu.core_type<tc>} {
    %c0 = arith.constant 0 : index
    %c0_0 = arith.constant 0 : index
    %0 = vector.load %arg0[%c0, %c0_0] : memref<88x32xf32, #tpu.memory_space<vmem>>, vector<88x32xf32>
    %c0_1 = arith.constant 0 : index
    %c0_2 = arith.constant 0 : index
    %1 = vector.load %arg1[%c0_1, %c0_2] : memref<88x1xf32, #tpu.memory_space<vmem>>, vector<88x1xf32>
    %cst = arith.constant dense<0.000000e+00> : vector<32xf32>
    %2 = vector.multi_reduction <add>, %0, %cst [0] : vector<88x32xf32> to vector<32xf32>
    %3 = vector.shape_cast %2 : vector<32xf32> to vector<1x32xf32>
    %cst_3 = arith.constant 0.0204081628 : f32
    %4 = vector.broadcast %cst_3 : f32 to vector<1x32xf32>
    %5 = arith.mulf %3, %4 : vector<1x32xf32>
    %6 = vector.broadcast %5 : vector<1x32xf32> to vector<88x32xf32>
    %7 = arith.subf %0, %6 : vector<88x32xf32>
    %8 = arith.mulf %7, %7 : vector<88x32xf32>
    %9 = vector.broadcast %1 : vector<88x1xf32> to vector<88x32xf32>
    %10 = arith.mulf %8, %9 : vector<88x32xf32>
    %cst_4 = arith.constant dense<0.000000e+00> : vector<32xf32>
    %11 = vector.multi_reduction <add>, %10, %cst_4 [0] : vector<88x32xf32> to vector<32xf32>
    %12 = vector.shape_cast %11 : vector<32xf32> to vector<1x32xf32>
    %cst_5 = arith.constant 0.0204081628 : f32
    %13 = vector.broadcast %cst_5 : f32 to vector<1x32xf32>
    %14 = arith.mulf %12, %13 : vector<1x32xf32>
    %c0_6 = arith.constant 0 : index
    %c0_7 = arith.constant 0 : index
    %15 = vector.load %arg2[%c0_6, %c0_7] : memref<1x32xf32, #tpu.memory_space<vmem>>, vector<1x32xf32>
    %cst_8 = arith.constant 1.000000e-03 : f32
    %16 = vector.broadcast %cst_8 : f32 to vector<1x32xf32>
    %17 = arith.addf %14, %16 : vector<1x32xf32>
    %18 = math.rsqrt %17 : vector<1x32xf32>
    %19 = arith.mulf %15, %18 : vector<1x32xf32>
    %c0_9 = arith.constant 0 : index
    %c0_10 = arith.constant 0 : index
    %20 = vector.load %arg3[%c0_9, %c0_10] : memref<1x32xf32, #tpu.memory_space<vmem>>, vector<1x32xf32>
    %21 = arith.mulf %5, %19 : vector<1x32xf32>
    %22 = arith.subf %20, %21 : vector<1x32xf32>
    %23 = vector.broadcast %19 : vector<1x32xf32> to vector<88x32xf32>
    %24 = arith.mulf %0, %23 : vector<88x32xf32>
    %25 = vector.broadcast %22 : vector<1x32xf32> to vector<88x32xf32>
    %26 = arith.addf %24, %25 : vector<88x32xf32>
    %cst_11 = arith.constant 0.000000e+00 : f32
    %27 = vector.broadcast %cst_11 : f32 to vector<88x32xf32>
    %28 = arith.maximumf %26, %27 : vector<88x32xf32>
    %29 = vector.broadcast %1 : vector<88x1xf32> to vector<88x32xf32>
    %30 = arith.mulf %28, %29 : vector<88x32xf32>
    %c0_12 = arith.constant 0 : index
    %c0_13 = arith.constant 0 : index
    %31 = vector.load %arg6[%c0_12, %c0_13] : memref<88x32xf32, #tpu.memory_space<vmem>>, vector<88x32xf32>
    tpu.vector_store %arg6[%c0_12, %c0_13], %30 {strides = array<i32>} : memref<88x32xf32, #tpu.memory_space<vmem>>, vector<88x32xf32>,
    %cst_14 = arith.constant 0.000000e+00 : f32
    %32 = vector.broadcast %cst_14 : f32 to vector<64x128xf32>
    %c0_15 = arith.constant 0 : index
    %c0_16 = arith.constant 0 : index
    %33 = vector.load %arg6[%c0_15, %c0_16] : memref<88x32xf32, #tpu.memory_space<vmem>>, vector<64x32xf32>
    %c0_17 = arith.constant 0 : index
    %c0_18 = arith.constant 0 : index
    %34 = vector.load %arg4[%c0_17, %c0_18] : memref<288x128xf32, #tpu.memory_space<vmem>>, vector<32x128xf32>
    %cst_19 = arith.constant dense<0.000000e+00> : vector<64x128xf32>
    %35 = tpu.matmul %33, %34, %cst_19 {dimension_numbers = #tpu.dot_dimension_numbers<[1], [0], [0], [1], [0, 0, 1, 1], [], []>} : vector<64x32xf32>, vector<32x128xf32>, vector<64x128xf32> -> vector<64x128xf32>
    %36 = arith.addf %32, %35 : vector<64x128xf32>
    %c1 = arith.constant 1 : index
    %c0_20 = arith.constant 0 : index
    %37 = vector.load %arg6[%c1, %c0_20] : memref<88x32xf32, #tpu.memory_space<vmem>>, vector<64x32xf32>
    %c32 = arith.constant 32 : index
    %c0_21 = arith.constant 0 : index
    %38 = vector.load %arg4[%c32, %c0_21] : memref<288x128xf32, #tpu.memory_space<vmem>>, vector<32x128xf32>
    %cst_22 = arith.constant dense<0.000000e+00> : vector<64x128xf32>
    %39 = tpu.matmul %37, %38, %cst_22 {dimension_numbers = #tpu.dot_dimension_numbers<[1], [0], [0], [1], [0, 0, 1, 1], [], []>} : vector<64x32xf32>, vector<32x128xf32>, vector<64x128xf32> -> vector<64x128xf32>
    %40 = arith.addf %36, %39 : vector<64x128xf32>
    %c2 = arith.constant 2 : index
    %c0_23 = arith.constant 0 : index
    %41 = vector.load %arg6[%c2, %c0_23] : memref<88x32xf32, #tpu.memory_space<vmem>>, vector<64x32xf32>
    %c64 = arith.constant 64 : index
    %c0_24 = arith.constant 0 : index
    %42 = vector.load %arg4[%c64, %c0_24] : memref<288x128xf32, #tpu.memory_space<vmem>>, vector<32x128xf32>
    %cst_25 = arith.constant dense<0.000000e+00> : vector<64x128xf32>
    %43 = tpu.matmul %41, %42, %cst_25 {dimension_numbers = #tpu.dot_dimension_numbers<[1], [0], [0], [1], [0, 0, 1, 1], [], []>} : vector<64x32xf32>, vector<32x128xf32>, vector<64x128xf32> -> vector<64x128xf32>
    %44 = arith.addf %40, %43 : vector<64x128xf32>
    %c9 = arith.constant 9 : index
    %c0_26 = arith.constant 0 : index
    %45 = vector.load %arg6[%c9, %c0_26] : memref<88x32xf32, #tpu.memory_space<vmem>>, vector<64x32xf32>
    %c96 = arith.constant 96 : index
    %c0_27 = arith.constant 0 : index
    %46 = vector.load %arg4[%c96, %c0_27] : memref<288x128xf32, #tpu.memory_space<vmem>>, vector<32x128xf32>
    %cst_28 = arith.constant dense<0.000000e+00> : vector<64x128xf32>
    %47 = tpu.matmul %45, %46, %cst_28 {dimension_numbers = #tpu.dot_dimension_numbers<[1], [0], [0], [1], [0, 0, 1, 1], [], []>} : vector<64x32xf32>, vector<32x128xf32>, vector<64x128xf32> -> vector<64x128xf32>
    %48 = arith.addf %44, %47 : vector<64x128xf32>
    %c10 = arith.constant 10 : index
    %c0_29 = arith.constant 0 : index
    %49 = vector.load %arg6[%c10, %c0_29] : memref<88x32xf32, #tpu.memory_space<vmem>>, vector<64x32xf32>
    %c128 = arith.constant 128 : index
    %c0_30 = arith.constant 0 : index
    %50 = vector.load %arg4[%c128, %c0_30] : memref<288x128xf32, #tpu.memory_space<vmem>>, vector<32x128xf32>
    %cst_31 = arith.constant dense<0.000000e+00> : vector<64x128xf32>
    %51 = tpu.matmul %49, %50, %cst_31 {dimension_numbers = #tpu.dot_dimension_numbers<[1], [0], [0], [1], [0, 0, 1, 1], [], []>} : vector<64x32xf32>, vector<32x128xf32>, vector<64x128xf32> -> vector<64x128xf32>
    %52 = arith.addf %48, %51 : vector<64x128xf32>
    %c11 = arith.constant 11 : index
    %c0_32 = arith.constant 0 : index
    %53 = vector.load %arg6[%c11, %c0_32] : memref<88x32xf32, #tpu.memory_space<vmem>>, vector<64x32xf32>
    %c160 = arith.constant 160 : index
    %c0_33 = arith.constant 0 : index
    %54 = vector.load %arg4[%c160, %c0_33] : memref<288x128xf32, #tpu.memory_space<vmem>>, vector<32x128xf32>
    %cst_34 = arith.constant dense<0.000000e+00> : vector<64x128xf32>
    %55 = tpu.matmul %53, %54, %cst_34 {dimension_numbers = #tpu.dot_dimension_numbers<[1], [0], [0], [1], [0, 0, 1, 1], [], []>} : vector<64x32xf32>, vector<32x128xf32>, vector<64x128xf32> -> vector<64x128xf32>
    %56 = arith.addf %52, %55 : vector<64x128xf32>
    %c18 = arith.constant 18 : index
    %c0_35 = arith.constant 0 : index
    %57 = vector.load %arg6[%c18, %c0_35] : memref<88x32xf32, #tpu.memory_space<vmem>>, vector<64x32xf32>
    %c192 = arith.constant 192 : index
    %c0_36 = arith.constant 0 : index
    %58 = vector.load %arg4[%c192, %c0_36] : memref<288x128xf32, #tpu.memory_space<vmem>>, vector<32x128xf32>
    %cst_37 = arith.constant dense<0.000000e+00> : vector<64x128xf32>
    %59 = tpu.matmul %57, %58, %cst_37 {dimension_numbers = #tpu.dot_dimension_numbers<[1], [0], [0], [1], [0, 0, 1, 1], [], []>} : vector<64x32xf32>, vector<32x128xf32>, vector<64x128xf32> -> vector<64x128xf32>
    %60 = arith.addf %56, %59 : vector<64x128xf32>
    %c19 = arith.constant 19 : index
    %c0_38 = arith.constant 0 : index
    %61 = vector.load %arg6[%c19, %c0_38] : memref<88x32xf32, #tpu.memory_space<vmem>>, vector<64x32xf32>
    %c224 = arith.constant 224 : index
    %c0_39 = arith.constant 0 : index
    %62 = vector.load %arg4[%c224, %c0_39] : memref<288x128xf32, #tpu.memory_space<vmem>>, vector<32x128xf32>
    %cst_40 = arith.constant dense<0.000000e+00> : vector<64x128xf32>
    %63 = tpu.matmul %61, %62, %cst_40 {dimension_numbers = #tpu.dot_dimension_numbers<[1], [0], [0], [1], [0, 0, 1, 1], [], []>} : vector<64x32xf32>, vector<32x128xf32>, vector<64x128xf32> -> vector<64x128xf32>
    %64 = arith.addf %60, %63 : vector<64x128xf32>
    %c20 = arith.constant 20 : index
    %c0_41 = arith.constant 0 : index
    %65 = vector.load %arg6[%c20, %c0_41] : memref<88x32xf32, #tpu.memory_space<vmem>>, vector<64x32xf32>
    %c256 = arith.constant 256 : index
    %c0_42 = arith.constant 0 : index
    %66 = vector.load %arg4[%c256, %c0_42] : memref<288x128xf32, #tpu.memory_space<vmem>>, vector<32x128xf32>
    %cst_43 = arith.constant dense<0.000000e+00> : vector<64x128xf32>
    %67 = tpu.matmul %65, %66, %cst_43 {dimension_numbers = #tpu.dot_dimension_numbers<[1], [0], [0], [1], [0, 0, 1, 1], [], []>} : vector<64x32xf32>, vector<32x128xf32>, vector<64x128xf32> -> vector<64x128xf32>
    %68 = arith.addf %64, %67 : vector<64x128xf32>
    %c0_44 = arith.constant 0 : index
    %c0_45 = arith.constant 0 : index
    %69 = vector.load %arg5[%c0_44, %c0_45] : memref<64x128xf32, #tpu.memory_space<vmem>>, vector<64x128xf32>
    tpu.vector_store %arg5[%c0_44, %c0_45], %68 {strides = array<i32>} : memref<64x128xf32, #tpu.memory_space<vmem>>, vector<64x128xf32>,
    return
  }
}

</mosaic_0001>

<bundles_post_ra>
// kernel: bn_relu_conv.1
= control target key start
LH: loop header
LB: loop body
LE: loop exit
PB: predicated region body
PF: predicated region fallthrough
CT: control target
= control target key end

     0   :  { %v2103_v0 = vmov 0   ;;  %vm42_vm0 = vcmask 261120   ;;  %s2652_s1 = inlined_call_operand.vmem [shape: f32[88,1], index: 1, kind: input, shape index: {}]   ;;  %s2653_s0 = inlined_call_operand.vmem [shape: f32[88,32], index: 0, kind: input, shape index: {}]   ;;  %s2654_s4 = inlined_call_operand.vmem [shape: f32[288,128], index: 4, kind: input, shape index: {}]   ;;  %s2655_s2 = inlined_call_operand.vmem [shape: f32[1,32], index: 2, kind: input, shape index: {}]   ;;  %s2656_s3 = inlined_call_operand.vmem [shape: f32[1,32], index: 3, kind: input, shape index: {}]   ;;  %s2657_s5 = inlined_call_operand.vmem [shape: f32[64,128], index: 5, kind: output, shape index: {}]  }
   0x1   :  { %2100 = vset.pattern.permute.xlu1 %v2103_v0  ;;  %2099 = vset.pattern.permute.xlu0 %v2103_v0  ;;  %v33_v1 = vld [vmem:[%s2652_s1 + $0x10] sm:$0xff]  ;;  %v31_v2 = vld [vmem:[%s2652_s1] sm:$0xff]  ;;  %v34_v3 = vld [vmem:[%s2652_s1 + $0x18] sm:$0xff] }
   0x2   :  { %105 = vperm.xlu1 %2100, %v33_v1   ;;  %95 = vperm.xlu0 %2099, %v31_v2   ;;  %v32_v4 = vld [vmem:[%s2652_s1 + $0x8] sm:$0xff]  ;;  %v35_v6 = vld [vmem:[%s2652_s1 + $0x20] sm:$0xff]  ;;  %v38_v7 = vld [vmem:[%s2652_s1 + $0x38] sm:$0xff] }
   0x3   :  { %v36_v5 = vld [vmem:[%s2652_s1 + $0x28] sm:$0xff]  ;;  %v37_v8 = vld [vmem:[%s2652_s1 + $0x30] sm:$0xff]  ;;  %v39_v10 = vld [vmem:[%s2652_s1 + $0x40] sm:$0xff] }
   0x4   :  { %v40_v9 = vld [vmem:[%s2652_s1 + $0x48] sm:$0xff]  ;;  %v41_v11 = vld [vmem:[%s2652_s1 + $0x50] sm:$0xff]  ;;  %v2170_v12 = vld [vmem:[%s2653_s0] sm:$0xff] }
   0x5   :  { %v2175_v13 = vld [vmem:[%s2653_s0 + $0x8] sm:$0xff]  ;;  %v43_v14 = vsel %vm42_vm0, %v2170_v12, 0.0  ;;  %v2184_v16 = vld [vmem:[%s2653_s0 + $0x10] sm:$0xff]  ;;  %v2191_v19 = vld [vmem:[%s2653_s0 + $0x18] sm:$0xff] }
   0x6   :  { %110 = vperm.xlu1 %2100, %v34_v3   ;;  %100 = vperm.xlu0 %2099, %v32_v4   ;;  %v44_v15 = vsel %vm42_vm0, %v2175_v13, 0.0  ;;  %v46_v18 = vsel %vm42_vm0, %v2184_v16, 0.0  ;;  %v48_v21 = vsel %vm42_vm0, %v2191_v19, 0.0  ;;  %v2198_v22 = vld [vmem:[%s2653_s0 + $0x20] sm:$0xff]  ;;  %v2205_v25 = vld [vmem:[%s2653_s0 + $0x28] sm:$0xff]  ;;  %v2219_v30 = vld [vmem:[%s2653_s0 + $0x30] sm:$0xff] }
   0x7   :  { %v45_v17 = vadd.f32 %v44_v15, %v43_v14  ;;  %v50_v24 = vsel %vm42_vm0, %v2198_v22, 0.0  ;;  %v281_v27 = vld [vmem:[%s2654_s4 + $0x20] sm:$0xff]  ;;  %v282_v28 = vld [vmem:[%s2654_s4 + $0x28] sm:$0xff]  ;;  %v52_v31 = vsel %vm42_vm0, %v2205_v25, 0.0  ;;  %v283_v35 = vld [vmem:[%s2654_s4 + $0x30] sm:$0xff]  ;;  %v54_v42 = vsel %vm42_vm0, %v2219_v30, 0.0 }
   0x8   :  { %v849_v29 = vld [vmem:[%s2654_s4 + $0x80] sm:$0xff]  ;;  %v1958_v32 = vpack.c.bf16 %v282_v28, %v281_v27  ;;  %v850_v33 = vld [vmem:[%s2654_s4 + $0x88] sm:$0xff]  ;;  %v284_v36 = vld [vmem:[%s2654_s4 + $0x38] sm:$0xff] }
   0x9   :  { %v47_v20 = vadd.f32 %v46_v18, %v45_v17  ;;  %v2226_v34 = vpack.c.bf16 %v850_v33, %v849_v29  ;;  %v851_v37 = vld [vmem:[%s2654_s4 + $0x90] sm:$0xff]  ;;  %v1962_v38 = vpack.c.bf16 %v284_v36, %v283_v35  ;;  %v852_v39 = vld [vmem:[%s2654_s4 + $0x98] sm:$0xff]  ;;  %v998_v46 = vld [vmem:[%s2654_s4 + $0xa0] sm:$0xff] }
   0xa   :  { %120 = vperm.xlu1 %2100, %v36_v5   ;;  %115 = vperm.xlu0 %2099, %v35_v6   ;;  %v2241_v41 = vpack.c.bf16 %v852_v39, %v851_v37  ;;  %v2249_v43 = vld [vmem:[%s2653_s0 + $0x38] sm:$0xff]  ;;  %v999_v47 = vld [vmem:[%s2654_s4 + $0xa8] sm:$0xff]  ;;  %v2264_v48 = vld [vmem:[%s2653_s0 + $0x40] sm:$0xff] }
   0xb   :  { %v49_v23 = vadd.f32 %v48_v21, %v47_v20  ;;  %1959 = vmatprep.subr.bf16.mxu1 %v1958_v32  ;;  %1991 = vmatprep.subr.bf16.mxu0 %v2226_v34  ;;  %v56_v45 = vsel %vm42_vm0, %v2249_v43, 0.0  ;;  %v269_v49 = vld [vmem:[%s2654_s4] sm:$0xff]  ;;  %v270_v50 = vld [vmem:[%s2654_s4 + $0x8] sm:$0xff]  ;;  %v2272_v51 = vpack.c.bf16 %v999_v47, %v998_v46  ;;  %v58_v54 = vsel %vm42_vm0, %v2264_v48, 0.0  ;;  %v2290_v58 = vld [vmem:[%s2653_s0 + $0x50] sm:$0xff] }
   0xc   :  { %1961 = vmatpush3.bf16.msra.mxu1 %v1958_v32  ;;  %1993 = vmatpush3.bf16.msra.mxu0 %v2226_v34  ;;  %v2274_v52 = vpack.c.bf16 %v270_v50, %v269_v49  ;;  %v2283_v55 = vld [vmem:[%s2653_s0 + $0x48] sm:$0xff]  ;;  %v62_v60 = vsel %vm42_vm0, %v2290_v58, 0.0 }
   0xd   :  { %v51_v26 = vadd.f32 %v50_v24, %v49_v23  ;;  %1963 = vmatprep.subr.bf16.mxu1 %v1962_v38  ;;  %1995 = vmatprep.subr.bf16.mxu0 %v2241_v41  ;;  %v60_v57 = vsel %vm42_vm0, %v2283_v55, 0.0 }
   0xe   :  { %130 = vperm.xlu1 %2100, %v38_v7   ;;  %125 = vperm.xlu0 %2099, %v37_v8  }
   0xf   :  { %v53_v40 = vadd.f32 %v52_v31, %v51_v26 }
  0x10   :  { %1965 = vmatpush3.bf16.msra.mxu1 %v1962_v38  ;;  %1997 = vmatpush3.bf16.msra.mxu0 %v2241_v41 }
  0x11   :  { %v55_v44 = vadd.f32 %v54_v42, %v53_v40  ;;  %1999 = vmatprep.subr.bf16.mxu0 %v2272_v51  ;;  %1967 = vmatprep.subr.bf16.mxu1 %v2274_v52 }
  0x12   :  { %140 = vperm.xlu1 %2100, %v40_v9   ;;  %135 = vperm.xlu0 %2099, %v39_v10  }
  0x13   :  { %v57_v53 = vadd.f32 %v56_v45, %v55_v44 }
  0x15   :  { %v59_v56 = vadd.f32 %v58_v54, %v57_v53 }
  0x16   :  { %145 = vperm.xlu0 %2099, %v41_v11  }
  0x17   :  { %v61_v59 = vadd.f32 %v60_v57, %v59_v56 }
  0x19   :  { %v63_v61 = vadd.f32 %v62_v60, %v61_v59 }
  0x1b   :  { %v64_v62 = vrot.slane %v63_v61, 4 }
  0x1d   :  { %v65_v63 = vadd.f32 %v64_v62, %v63_v61 }
  0x1f   :  { %v66_v0 = vrot.slane %v65_v63, 2 }
  0x21   :  { %v67_v1 = vadd.f32 %v66_v0, %v65_v63 }
  0x23   :  { %v68_v2 = vrot.slane %v67_v1, 1 }
  0x25   :  { %v69_v3 = vadd.f32 %v68_v2, %v67_v1 }
  0x27   :  { %v2294_v4 = vmul.f32 0.020408163, %v69_v3 }
  0x29   :  { %v71_v5 = vsub.f32 %v2170_v12, %v2294_v4  ;;  %v73_v6 = vsub.f32 %v2184_v16, %v2294_v4  ;;  %v72_v7 = vsub.f32 %v2175_v13, %v2294_v4  ;;  %v74_v9 = vsub.f32 %v2191_v19, %v2294_v4 }
  0x2a   :  { %v75_v17 = vsub.f32 %v2198_v22, %v2294_v4  ;;  %v76_v21 = vsub.f32 %v2205_v25, %v2294_v4  ;;  %v77_v29 = vsub.f32 %v2219_v30, %v2294_v4  ;;  %v78_v31 = vsub.f32 %v2249_v43, %v2294_v4 }
  0x2b   :  { %v82_v8 = vmul.f32 %v71_v5, %v71_v5  ;;  %v84_v14 = vmul.f32 %v73_v6, %v73_v6  ;;  %v83_v15 = vmul.f32 %v72_v7, %v72_v7  ;;  %v85_v20 = vmul.f32 %v74_v9, %v74_v9 }
  0x2c   :  { %v86_v28 = vmul.f32 %v75_v17, %v75_v17  ;;  %v87_v36 = vmul.f32 %v76_v21, %v76_v21  ;;  %v88_v44 = vmul.f32 %v77_v29, %v77_v29  ;;  %v79_v45 = vsub.f32 %v2264_v48, %v2294_v4 }
  0x2d   :  { %v89_v50 = vmul.f32 %v78_v31, %v78_v31  ;;  %v80_v53 = vsub.f32 %v2283_v55, %v2294_v4  ;;  %v81_v62 = vsub.f32 %v2290_v58, %v2294_v4 }
  0x2e   :  { %v90_v61 = vmul.f32 %v79_v45, %v79_v45 }
  0x2f   :  { %v91_v2 = vmul.f32 %v80_v53, %v80_v53  ;;  %v92_v9 = vmul.f32 %v81_v62, %v81_v62 }
  0x81   :  { %v2304_v10 = vpop.permute.xlu1 %105  ;;  %v2306_v11 = vpop.permute.xlu0 %95 }
  0x82   :  { %v148_v18 = vmul.f32 %v2306_v11, %v82_v8  ;;  %v150_v26 = vmul.f32 %v2304_v10, %v84_v14 }
  0x84   :  { %v159_v32 = vsel %vm42_vm0, %v148_v18, 0.0  ;;  %v162_v40 = vsel %vm42_vm0, %v150_v26, 0.0 }
  0x85   :  { %v2313_v23 = vpop.permute.xlu1 %110  ;;  %v2315_v24 = vpop.permute.xlu0 %100 }
  0x86   :  { %v149_v27 = vmul.f32 %v2315_v24, %v83_v15  ;;  %v151_v33 = vmul.f32 %v2313_v23, %v85_v20 }
  0x88   :  { %v160_v35 = vsel %vm42_vm0, %v149_v27, 0.0  ;;  %v164_v47 = vsel %vm42_vm0, %v151_v33, 0.0 }
  0x89   :  { %v161_v37 = vadd.f32 %v160_v35, %v159_v32  ;;  %v2326_v38 = vpop.permute.xlu1 %120  ;;  %v2328_v39 = vpop.permute.xlu0 %115 }
  0x8a   :  { %v152_v42 = vmul.f32 %v2328_v39, %v86_v28  ;;  %v153_v49 = vmul.f32 %v2326_v38, %v87_v36 }
  0x8b   :  { %v163_v46 = vadd.f32 %v162_v40, %v161_v37 }
  0x8c   :  { %v166_v59 = vsel %vm42_vm0, %v152_v42, 0.0  ;;  %v168_v0 = vsel %vm42_vm0, %v153_v49, 0.0  ;;  %v187_v49 = vld [vmem:[%s2655_s2] sm:$0x1] }
  0x8d   :  { %v165_v54 = vadd.f32 %v164_v47, %v163_v46  ;;  %v2338_v56 = vpop.permute.xlu1 %130  ;;  %v2340_v57 = vpop.permute.xlu0 %125  ;;  %v195_v46 = vlaneseq }
  0x8e   :  { %v154_v60 = vmul.f32 %v2340_v57, %v88_v44  ;;  %v155_v1 = vmul.f32 %v2338_v56, %v89_v50 }
  0x8f   :  { %v167_v63 = vadd.f32 %v166_v59, %v165_v54  ;;  %v196_v47 = vshrl.u32 %v195_v46, 7  ;;  %v191_v59 = vld [vmem:[%s2656_s3] sm:$0x1]  ;;  %v271_v46 = vld [vmem:[%s2654_s4 + $0x10] sm:$0xff] }
  0x90   :  { %v170_v7 = vsel %vm42_vm0, %v154_v60, 0.0  ;;  %v172_v15 = vsel %vm42_vm0, %v155_v1, 0.0 }
  0x91   :  { %v169_v3 = vadd.f32 %v168_v0, %v167_v63  ;;  %v2348_v5 = vpop.permute.xlu1 %140  ;;  %v2350_v6 = vpop.permute.xlu0 %135  ;;  %v197_v50 = vsub.s32 0, %v196_v47  ;;  %v272_v47 = vld [vmem:[%s2654_s4 + $0x18] sm:$0xff] }
  0x92   :  { %v156_v8 = vmul.f32 %v2350_v6, %v90_v61  ;;  %v157_v17 = vmul.f32 %v2348_v5, %v91_v2 }
  0x93   :  { %v171_v14 = vadd.f32 %v170_v7, %v169_v3 }
  0x94   :  { %v174_v21 = vsel %vm42_vm0, %v156_v8, 0.0  ;;  %v176_v28 = vsel %vm42_vm0, %v157_v17, 0.0 }
  0x95   :  { %v173_v18 = vadd.f32 %v172_v15, %v171_v14  ;;  %v146_v20 = vpop.permute.xlu0 %145 }
  0x96   :  { %v158_v26 = vmul.f32 %v146_v20, %v92_v9 }
  0x97   :  { %v175_v27 = vadd.f32 %v174_v21, %v173_v18 }
  0x98   :  { %v178_v31 = vsel %vm42_vm0, %v158_v26, 0.0 }
  0x99   :  { %v177_v29 = vadd.f32 %v176_v28, %v175_v27 }
  0x9b   :  { %v179_v32 = vadd.f32 %v178_v31, %v177_v29 }
  0x9d   :  { %v180_v33 = vrot.slane %v179_v32, 4 }
  0x9f   :  { %v181_v35 = vadd.f32 %v180_v33, %v179_v32 }
  0xa1   :  { %v182_v36 = vrot.slane %v181_v35, 2 }
  0xa3   :  { %v183_v37 = vadd.f32 %v182_v36, %v181_v35 }
  0xa5   :  { %v184_v40 = vrot.slane %v183_v37, 1 }
  0xa7   :  { %v185_v42 = vadd.f32 %v184_v40, %v183_v37 }
  0xa9   :  { %v186_v44 = vmul.f32 0.020408163, %v185_v42 }
  0xab   :  { %v188_v45 = vadd.f32 0.001, %v186_v44 }
  0xad   :  { %2101 = vrsqrt.f32 %v188_v45  ;;  %v1001_v45 = vld [vmem:[%s2654_s4 + $0xb8] sm:$0xff] }
  0xb7   :  { %v2102_v53 = vpop.eup %2101 }
  0xb8   :  { %v190_v54 = vmul.f32 %v2102_v53, %v187_v49  ;;  %v1970_v53 = vpack.c.bf16 %v272_v47, %v271_v46 }
  0xba   :  { %v192_v60 = vmul.f32 %v190_v54, %v2294_v4  ;;  %v198_v61 = vrot.slane %v190_v54, %v197_v50  ;;  %v1147_v54 = vld [vmem:[%s2654_s4 + $0xc0] sm:$0xff] }
  0xbc   :  { %v193_v62 = vsub.f32 %v191_v59, %v192_v60  ;;  %v210_v63 = vmul.f32 %v198_v61, %v2290_v58  ;;  %v200_v0 = vmul.f32 %v198_v61, %v2170_v12  ;;  %v201_v1 = vmul.f32 %v198_v61, %v2175_v13  ;;  %v1148_v59 = vld [vmem:[%s2654_s4 + $0xc8] sm:$0xff] }
  0xbd   :  { %v202_v2 = vmul.f32 %v198_v61, %v2184_v16  ;;  %v203_v7 = vmul.f32 %v198_v61, %v2191_v19  ;;  %v204_v8 = vmul.f32 %v198_v61, %v2198_v22  ;;  %v205_v9 = vmul.f32 %v198_v61, %v2205_v25 }
  0xbe   :  { %v215_v3 = vrot.slane %v193_v62, %v197_v50  ;;  %v206_v14 = vmul.f32 %v198_v61, %v2219_v30  ;;  %v207_v4 = vmul.f32 %v198_v61, %v2249_v43  ;;  %v208_v15 = vmul.f32 %v198_v61, %v2264_v48 }
  0xbf   :  { %v209_v58 = vmul.f32 %v198_v61, %v2283_v55  ;;  %v2006_v62 = vpack.c.bf16 %v1148_v59, %v1147_v54 }
  0xc0   :  { %v227_v12 = vadd.f32 %v215_v3, %v210_v63  ;;  %v217_v17 = vadd.f32 %v215_v3, %v200_v0  ;;  %v218_v13 = vadd.f32 %v215_v3, %v201_v1  ;;  %v219_v18 = vadd.f32 %v215_v3, %v202_v2  ;;  %v551_v63 = vld [vmem:[%s2654_s4 + $0x40] sm:$0xff]  ;;  %v1149_v2 = vld [vmem:[%s2654_s4 + $0xd0] sm:$0xff] }
  0xc1   :  { %v220_v16 = vadd.f32 %v215_v3, %v203_v7  ;;  %v221_v21 = vadd.f32 %v215_v3, %v204_v8  ;;  %v222_v26 = vadd.f32 %v215_v3, %v205_v9  ;;  %v223_v19 = vadd.f32 %v215_v3, %v206_v14 }
  0xc2   :  { %v238_v27 = vmax.f32 %v227_v12, 0.0  ;;  %v228_v22 = vmax.f32 %v217_v17, 0.0  ;;  %v229_v28 = vmax.f32 %v218_v13, 0.0  ;;  %v230_v25 = vmax.f32 %v219_v18, 0.0  ;;  %v1297_v12 = vld [vmem:[%s2654_s4 + $0xe8] sm:$0xff]  ;;  %v553_v13 = vld [vmem:[%s2654_s4 + $0x50] sm:$0xff] }
  0xc3   :  { %v231_v29 = vmax.f32 %v220_v16, 0.0  ;;  %v232_v30 = vmax.f32 %v221_v21, 0.0  ;;  %v233_v31 = vmax.f32 %v222_v26, 0.0  ;;  %v234_v43 = vmax.f32 %v223_v19, 0.0  ;;  %v554_v21 = vld [vmem:[%s2654_s4 + $0x58] sm:$0xff] }
  0xc4   :  { %v249_v32 = vmul.f32 %v238_v27, %v146_v20  ;;  %v239_v48 = vmul.f32 %v228_v22, %v2306_v11  ;;  %v240_v55 = vmul.f32 %v229_v28, %v2315_v24  ;;  %v241_v33 = vmul.f32 %v230_v25, %v2304_v10 }
  0xc5   :  { %v242_v35 = vmul.f32 %v231_v29, %v2313_v23  ;;  %v243_v36 = vmul.f32 %v232_v30, %v2328_v39  ;;  %v244_v37 = vmul.f32 %v233_v31, %v2326_v38  ;;  %v245_v40 = vmul.f32 %v234_v43, %v2340_v57  ;;  %v1000_v39 = vld [vmem:[%s2654_s4 + $0xb0] sm:$0xff]  ;;  %v700_v30 = vld [vmem:[%s2654_s4 + $0x60] sm:$0xff]  ;;  %v701_v31 = vld [vmem:[%s2654_s4 + $0x68] sm:$0xff] }
  0xc6   :  { %260 = vst.msk [vmem:[#allocation2 + $0x50] sm:$0xff] %vm42_vm0, %v249_v32  ;;  %250 = vst.msk [vmem:[#allocation2] sm:$0xff] %vm42_vm0, %v239_v48  ;;  %v224_v11 = vadd.f32 %v215_v3, %v207_v4  ;;  %v225_v24 = vadd.f32 %v215_v3, %v208_v15  ;;  %v226_v20 = vadd.f32 %v215_v3, %v209_v58  ;;  %v1150_v3 = vld [vmem:[%s2654_s4 + $0xd8] sm:$0xff]  ;;  %v1296_v58 = vld [vmem:[%s2654_s4 + $0xe0] sm:$0xff] }
  0xc7   :  { %251 = vst.msk [vmem:[#allocation2 + $0x8] sm:$0xff] %vm42_vm0, %v240_v55  ;;  %252 = vst.msk [vmem:[#allocation2 + $0x10] sm:$0xff] %vm42_vm0, %v241_v33  ;;  %v2002_v50 = vpack.c.bf16 %v1001_v45, %v1000_v39  ;;  %v2010_v4 = vpack.c.bf16 %v1150_v3, %v1149_v2  ;;  %v2014_v26 = vpack.c.bf16 %v1297_v12, %v1296_v58  ;;  %v1298_v32 = vld [vmem:[%s2654_s4 + $0xf0] sm:$0xff]  ;;  %v703_v39 = vld [vmem:[%s2654_s4 + $0x78] sm:$0xff] }
  0xc8   :  { %253 = vst.msk [vmem:[#allocation2 + $0x18] sm:$0xff] %vm42_vm0, %v242_v35  ;;  %254 = vst.msk [vmem:[#allocation2 + $0x20] sm:$0xff] %vm42_vm0, %v243_v36  ;;  %v235_v10 = vmax.f32 %v224_v11, 0.0  ;;  %v236_v23 = vmax.f32 %v225_v24, 0.0  ;;  %v237_v38 = vmax.f32 %v226_v20, 0.0  ;;  %v1978_v22 = vpack.c.bf16 %v554_v21, %v553_v13  ;;  %v1299_v35 = vld [vmem:[%s2654_s4 + $0xf8] sm:$0xff] }
  0xc9   :  { %255 = vst.msk [vmem:[#allocation2 + $0x28] sm:$0xff] %vm42_vm0, %v244_v37  ;;  %256 = vst.msk [vmem:[#allocation2 + $0x30] sm:$0xff] %vm42_vm0, %v245_v40  ;;  %v1982_v33 = vpack.c.bf16 %v701_v31, %v700_v30  ;;  %v2018_v37 = vpack.c.bf16 %v1299_v35, %v1298_v32  ;;  %v1445_v24 = vld [vmem:[%s2654_s4 + $0x100] sm:$0xff]  ;;  %v1446_v20 = vld [vmem:[%s2654_s4 + $0x108] sm:$0xff] }
  0xca   :  { %v246_v57 = vmul.f32 %v235_v10, %v2338_v56  ;;  %v247_v42 = vmul.f32 %v236_v23, %v2350_v6  ;;  %v248_v44 = vmul.f32 %v237_v38, %v2348_v5  ;;  %v702_v10 = vld [vmem:[%s2654_s4 + $0x70] sm:$0xff] }
  0xcb   :  { %v1986_v45 = vpack.c.bf16 %v703_v39, %v702_v10 }
  0xcc   :  { %257 = vst.msk [vmem:[#allocation2 + $0x38] sm:$0xff] %vm42_vm0, %v246_v57  ;;  %258 = vst.msk [vmem:[#allocation2 + $0x40] sm:$0xff] %vm42_vm0, %v247_v42  ;;  %v2022_v57 = vpack.c.bf16 %v1446_v20, %v1445_v24 }
  0xcd   :  { %259 = vst.msk [vmem:[#allocation2 + $0x48] sm:$0xff] %vm42_vm0, %v248_v44  ;;  %v261_v19 = vld [vmem:[#allocation2] sm:$0xff] }
  0xce   :  { %v273_v56 = vld [vmem:[#allocation2 + $0x1] sm:$0xff]  ;;  %v2410_v5 = vld [vmem:[#allocation2 + $0xa] sm:$0xff] }
  0xcf   :  { %v2412_v6 = vld [vmem:[#allocation2 + $0x9] sm:$0xff]  ;;  %1786 = vmatprep.mubr.msk.f32.mxu1 %vm42_vm0, %v273_v56  ;;  %1866 = vmatprep.mubr.msk.f32.mxu0 %vm42_vm0, %v2410_v5  ;;  %v2417_v49 = vld [vmem:[#allocation2 + $0x12] sm:$0xff]  ;;  %v2433_v61 = vld [vmem:[#allocation2 + $0x1a] sm:$0xff] }
  0xd0   :  { %1787 = vmatmul.mubr.msk.f32.vlgmr.msra.gmra.mrb[0].mxu1 %vm42_vm0, %v2412_v6  ;;  %1867 = vmatmul.mubr.msk.f32.vlgmr.msra.gmra.mrb[0].mxu0 %vm42_vm0, %v2417_v49  ;;  %v2431_v60 = vld [vmem:[#allocation2 + $0x11] sm:$0xff]  ;;  %v2442_v0 = vld [vmem:[#allocation2 + $0x19] sm:$0xff]  ;;  %v2453_v1 = vld [vmem:[#allocation2 + $0x21] sm:$0xff] }
  0xd1   :  { %1969 = vmatpush3.bf16.msra.mxu1 %v2274_v52  ;;  %2001 = vmatpush3.bf16.msra.mxu0 %v2272_v51  ;;  %v2444_v52 = vld [vmem:[#allocation2 + $0x22] sm:$0xff]  ;;  %v990_v7 = vld [vmem:[#allocation2 + $0xb] sm:$0xff]  ;;  %v2466_v14 = vld [vmem:[#allocation2 + $0x13] sm:$0xff] }
  0xd2   :  { %1789 = vmatprep.mubr.msk.f32.mxu1 %vm42_vm0, %v2431_v60  ;;  %1869 = vmatprep.mubr.msk.f32.mxu0 %vm42_vm0, %v2433_v61  ;;  %v552_v51 = vld [vmem:[%s2654_s4 + $0x48] sm:$0xff]  ;;  %v2482_v17 = vld [vmem:[#allocation2 + $0x1b] sm:$0xff]  ;;  %v263_v29 = vld [vmem:[#allocation2 + $0x10] sm:$0xff] }
  0xd3   :  { %2003 = vmatprep.subr.bf16.mxu0 %v2002_v50  ;;  %1971 = vmatprep.subr.bf16.mxu1 %v1970_v53  ;;  %v1974_v8 = vpack.c.bf16 %v552_v51, %v551_v63  ;;  %v2464_v9 = vld [vmem:[#allocation2 + $0x29] sm:$0xff]  ;;  %v2472_v15 = vld [vmem:[#allocation2 + $0x31] sm:$0xff]  ;;  %v2489_v18 = vld [vmem:[#allocation2 + $0x39] sm:$0xff] }
  0xd4   :  { %1790 = vmatmul.mubr.msk.f32.gmra.mrb[2].mxu1 %vm42_vm0, %v2442_v0  ;;  %1870 = vmatmul.mubr.msk.f32.gmra.mrb[2].mxu0 %vm42_vm0, %v2444_v52  ;;  %v2491_v16 = vld [vmem:[#allocation2 + $0x23] sm:$0xff]  ;;  %v2500_v27 = vld [vmem:[#allocation2 + $0x2b] sm:$0xff]  ;;  %v2505_v25 = vld [vmem:[#allocation2 + $0x33] sm:$0xff] }
  0xd5   :  { %2005 = vmatpush3.bf16.msra.mxu0 %v2002_v50  ;;  %1792 = vmatprep.mubr.msk.f32.mxu1 %vm42_vm0, %v2453_v1  ;;  %v262_v28 = vld [vmem:[#allocation2 + $0x8] sm:$0xff]  ;;  %v2517_v43 = vld [vmem:[#allocation2 + $0x3b] sm:$0xff]  ;;  %v267_v11 = vld [vmem:[#allocation2 + $0x30] sm:$0xff] }
  0xd6   :  { %1886 = vmatprep.mubr.msk.f32.mxu0 %vm42_vm0, %v990_v7  ;;  %2007 = vmatprep.subr.bf16.mxu0 %v2006_v62  ;;  %v264_v48 = vld [vmem:[#allocation2 + $0x18] sm:$0xff]  ;;  %v2524_v55 = vld [vmem:[#allocation2 + $0x43] sm:$0xff]  ;;  %v1447_v50 = vld [vmem:[%s2654_s4 + $0x110] sm:$0xff] }
  0xd7   :  { %1973 = vmatpush3.bf16.msra.mxu1 %v1970_v53  ;;  %v265_v36 = vld [vmem:[#allocation2 + $0x20] sm:$0xff]  ;;  %v266_v40 = vld [vmem:[#allocation2 + $0x28] sm:$0xff]  ;;  %v268_v23 = vld [vmem:[#allocation2 + $0x38] sm:$0xff] }
  0xd8   :  { %1793 = vmatmul.mubr.msk.f32.gmra.mrb[4].mxu1 %vm42_vm0, %v2464_v9  ;;  %1887 = vmatmul.mubr.msk.f32.vlgmr.msra.gmra.mrb[0].mxu0 %vm42_vm0, %v2466_v14  ;;  %v2550_v38 = vld [vmem:[#allocation2 + $0x2a] sm:$0xff]  ;;  %v543_v42 = vld [vmem:[#allocation2 + $0x2] sm:$0xff]  ;;  %v1143_v44 = vld [vmem:[#allocation2 + $0x32] sm:$0xff] }
  0xd9   :  { %2009 = vmatpush3.bf16.msra.mxu0 %v2006_v62  ;;  %1795 = vmatprep.mubr.msk.f32.mxu1 %vm42_vm0, %v2472_v15  ;;  %v1144_v46 = vld [vmem:[#allocation2 + $0x3a] sm:$0xff]  ;;  %v1145_v47 = vld [vmem:[#allocation2 + $0x42] sm:$0xff]  ;;  %v1146_v56 = vld [vmem:[#allocation2 + $0x4a] sm:$0xff] }
  0xda   :  { %1889 = vmatprep.mubr.msk.f32.mxu0 %vm42_vm0, %v2482_v17  ;;  %1975 = vmatprep.subr.bf16.mxu1 %v1974_v8  ;;  %v1448_v53 = vld [vmem:[%s2654_s4 + $0x118] sm:$0xff]  ;;  %v1439_v54 = vld [vmem:[#allocation2 + $0x24] sm:$0xff]  ;;  %v1444_v63 = vld [vmem:[#allocation2 + $0x4c] sm:$0xff] }
  0xdb   :  { %2011 = vmatprep.subr.bf16.mxu0 %v2010_v4  ;;  %v699_v59 = vld [vmem:[#allocation2 + $0x41] sm:$0xff] }
  0xdc   :  { %1796 = vmatmul.mubr.msk.f32.gmra.mrb[6].mxu1 %vm42_vm0, %v2489_v18  ;;  %1890 = vmatmul.mubr.msk.f32.gmra.mrb[2].mxu0 %vm42_vm0, %v2491_v16  ;;  %v1443_v62 = vld [vmem:[#allocation2 + $0x44] sm:$0xff] }
  0xdd   :  { %1806 = vmatprep.mubr.msk.f32.mxu1 %vm42_vm0, %v261_v19  ;;  %1892 = vmatprep.mubr.msk.f32.mxu0 %vm42_vm0, %v2500_v27 }
  0xde   :  { %2013 = vmatpush3.bf16.msra.mxu0 %v2010_v4 }
  0xdf   :  { %2015 = vmatprep.subr.bf16.mxu0 %v2014_v26 }
  0xe0   :  { %1807 = vmatmul.mubr.msk.f32.vlgmr.msra.gmra.mrb[0].mxu1 %vm42_vm0, %v262_v28  ;;  %1893 = vmatmul.mubr.msk.f32.gmra.mrb[4].mxu0 %vm42_vm0, %v2505_v25 }
  0xe1   :  { %1977 = vmatpush3.bf16.msra.mxu1 %v1974_v8  ;;  %1809 = vmatprep.mubr.msk.f32.mxu1 %vm42_vm0, %v263_v29 }
  0xe2   :  { %1895 = vmatprep.mubr.msk.f32.mxu0 %vm42_vm0, %v2517_v43  ;;  %1979 = vmatprep.subr.bf16.mxu1 %v1978_v22 }
  0xe4   :  { %1810 = vmatmul.mubr.msk.f32.gmra.mrb[2].mxu1 %vm42_vm0, %v264_v48  ;;  %1896 = vmatmul.mubr.msk.f32.gmra.mrb[6].mxu0 %vm42_vm0, %v2524_v55 }
  0xe5   :  { %1812 = vmatprep.mubr.msk.f32.mxu1 %vm42_vm0, %v265_v36  ;;  %1906 = vmatprep.mubr.msk.f32.mxu0 %vm42_vm0, %v2417_v49 }
  0xe6   :  { %1981 = vmatpush3.bf16.msra.mxu1 %v1978_v22 }
  0xe7   :  { %1983 = vmatprep.subr.bf16.mxu1 %v1982_v33 }
  0xe8   :  { %1813 = vmatmul.mubr.msk.f32.gmra.mrb[4].mxu1 %vm42_vm0, %v266_v40  ;;  %1907 = vmatmul.mubr.msk.f32.vlgmr.msra.gmra.mrb[0].mxu0 %vm42_vm0, %v2433_v61 }
  0xe9   :  { %2017 = vmatpush3.bf16.msra.mxu0 %v2014_v26  ;;  %1815 = vmatprep.mubr.msk.f32.mxu1 %vm42_vm0, %v267_v11 }
  0xea   :  { %1909 = vmatprep.mubr.msk.f32.mxu0 %vm42_vm0, %v2444_v52  ;;  %2019 = vmatprep.subr.bf16.mxu0 %v2018_v37 }
  0xec   :  { %1816 = vmatmul.mubr.msk.f32.gmra.mrb[6].mxu1 %vm42_vm0, %v268_v23  ;;  %1910 = vmatmul.mubr.msk.f32.gmra.mrb[2].mxu0 %vm42_vm0, %v2550_v38 }
  0xed   :  { %1826 = vmatprep.mubr.msk.f32.mxu1 %vm42_vm0, %v543_v42  ;;  %1912 = vmatprep.mubr.msk.f32.mxu0 %vm42_vm0, %v1143_v44 }
  0xee   :  { %2021 = vmatpush3.bf16.msra.mxu0 %v2018_v37 }
  0xef   :  { %2023 = vmatprep.subr.bf16.mxu0 %v2022_v57 }
  0xf0   :  { %1827 = vmatmul.mubr.msk.f32.vlgmr.msra.gmra.mrb[0].mxu1 %vm42_vm0, %v2410_v5  ;;  %1913 = vmatmul.mubr.msk.f32.gmra.mrb[4].mxu0 %vm42_vm0, %v1144_v46  ;;  %v2026_v5 = vpack.c.bf16 %v1448_v53, %v1447_v50 }
  0xf1   :  { %1985 = vmatpush3.bf16.msra.mxu1 %v1982_v33  ;;  %1829 = vmatprep.mubr.msk.f32.mxu1 %vm42_vm0, %v2417_v49  ;;  %v1437_v49 = vld [vmem:[#allocation2 + $0x14] sm:$0xff] }
  0xf2   :  { %1915 = vmatprep.mubr.msk.f32.mxu0 %vm42_vm0, %v1145_v47  ;;  %1987 = vmatprep.subr.bf16.mxu1 %v1986_v45 }
  0xf4   :  { %1830 = vmatmul.mubr.msk.f32.gmra.mrb[2].mxu1 %vm42_vm0, %v2433_v61  ;;  %1916 = vmatmul.mubr.msk.f32.gmra.mrb[6].mxu0 %vm42_vm0, %v1146_v56  ;;  %v1441_v61 = vld [vmem:[#allocation2 + $0x34] sm:$0xff] }
  0xf5   :  { %1832 = vmatprep.mubr.msk.f32.mxu1 %vm42_vm0, %v2444_v52  ;;  %1926 = vmatprep.mubr.msk.f32.mxu0 %vm42_vm0, %v2466_v14 }
  0xf6   :  { %1989 = vmatpush3.bf16.msra.mxu1 %v1986_v45 }
  0xf7   :  { %2030 = vmatprep.subr.bf16.mxu1 %v2226_v34 }
  0xf8   :  { %1833 = vmatmul.mubr.msk.f32.gmra.mrb[4].mxu1 %vm42_vm0, %v2550_v38  ;;  %1927 = vmatmul.mubr.msk.f32.vlgmr.msra.gmra.mrb[0].mxu0 %vm42_vm0, %v2482_v17 }
  0xf9   :  { %2025 = vmatpush3.bf16.msra.mxu0 %v2022_v57  ;;  %1835 = vmatprep.mubr.msk.f32.mxu1 %vm42_vm0, %v1143_v44 }
  0xfa   :  { %1929 = vmatprep.mubr.msk.f32.mxu0 %vm42_vm0, %v2491_v16  ;;  %2027 = vmatprep.subr.bf16.mxu0 %v2026_v5 }
  0xfc   :  { %1836 = vmatmul.mubr.msk.f32.gmra.mrb[6].mxu1 %vm42_vm0, %v1144_v46  ;;  %1930 = vmatmul.mubr.msk.f32.gmra.mrb[2].mxu0 %vm42_vm0, %v2500_v27 }
  0xfd   :  { %1846 = vmatprep.mubr.msk.f32.mxu1 %vm42_vm0, %v2412_v6  ;;  %1932 = vmatprep.mubr.msk.f32.mxu0 %vm42_vm0, %v2505_v25  ;;  %v1295_v6 = vld [vmem:[#allocation2 + $0x4b] sm:$0xff] }
  0xfe   :  { %2029 = vmatpush3.bf16.msra.mxu0 %v2026_v5 }
 0x100   :  { %1847 = vmatmul.mubr.msk.f32.vlgmr.msra.gmra.mrb[0].mxu1 %vm42_vm0, %v2431_v60  ;;  %1933 = vmatmul.mubr.msk.f32.gmra.mrb[4].mxu0 %vm42_vm0, %v2517_v43  ;;  %v1440_v60 = vld [vmem:[#allocation2 + $0x2c] sm:$0xff] }
 0x101   :  { %2032 = vmatpush3.bf16.msra.mxu1 %v2226_v34  ;;  %1849 = vmatprep.mubr.msk.f32.mxu1 %vm42_vm0, %v2442_v0  ;;  %v1438_v34 = vld [vmem:[#allocation2 + $0x1c] sm:$0xff] }
 0x102   :  { %1935 = vmatprep.mubr.msk.f32.mxu0 %vm42_vm0, %v2524_v55  ;;  %2031 = vmatprep.subr.bf16.mxu1 %v2241_v41 }
 0x104   :  { %1850 = vmatmul.mubr.msk.f32.gmra.mrb[2].mxu1 %vm42_vm0, %v2453_v1  ;;  %1936 = vmatmul.mubr.msk.f32.gmra.mrb[6].mxu0 %vm42_vm0, %v1295_v6 }
 0x105   :  { %1852 = vmatprep.mubr.msk.f32.mxu1 %vm42_vm0, %v2464_v9  ;;  %1946 = vmatprep.mubr.msk.f32.mxu0 %vm42_vm0, %v1437_v49 }
 0x106   :  { %2033 = vmatpush3.bf16.msra.mxu1 %v2241_v41  ;;  %v1442_v41 = vld [vmem:[#allocation2 + $0x3c] sm:$0xff] }
 0x108   :  { %1853 = vmatmul.mubr.msk.f32.gmra.mrb[4].mxu1 %vm42_vm0, %v2472_v15  ;;  %1947 = vmatmul.mubr.msk.f32.vlgmr.msra.gmra.mrb[0].mxu0 %vm42_vm0, %v1438_v34 }
 0x109   :  { %1855 = vmatprep.mubr.msk.f32.mxu1 %vm42_vm0, %v2489_v18  ;;  %1949 = vmatprep.mubr.msk.f32.mxu0 %vm42_vm0, %v1439_v54 }
 0x10c   :  { %1856 = vmatmul.mubr.msk.f32.gmra.mrb[6].mxu1 %vm42_vm0, %v699_v59  ;;  %1950 = vmatmul.mubr.msk.f32.gmra.mrb[2].mxu0 %vm42_vm0, %v1440_v60 }
 0x10d   :  { %1872 = vmatprep.mubr.msk.f32.mxu1 %vm42_vm0, %v2550_v38  ;;  %1952 = vmatprep.mubr.msk.f32.mxu0 %vm42_vm0, %v1441_v61 }
 0x110   :  { %1873 = vmatmul.mubr.msk.f32.vlgmr.msra.gmra.mrb[4].mxu1 %vm42_vm0, %v1143_v44  ;;  %1953 = vmatmul.mubr.msk.f32.gmra.mrb[4].mxu0 %vm42_vm0, %v1442_v41 }
 0x111   :  { %1875 = vmatprep.mubr.msk.f32.mxu1 %vm42_vm0, %v1144_v46  ;;  %1955 = vmatprep.mubr.msk.f32.mxu0 %vm42_vm0, %v1443_v62 }
 0x114   :  { %1876 = vmatmul.mubr.msk.f32.gmra.mrb[6].mxu1 %vm42_vm0, %v1145_v47  ;;  %1956 = vmatmul.mubr.msk.f32.gmra.mrb[6].mxu0 %vm42_vm0, %v1444_v63 }
 0x1d3   :  { %v1848_v0 = vpop.f32.mrb[0].mxu1 }
 0x1d4   :  { %v794_v52 = vpop.f32.mrb[1].mxu1 }
 0x1d7   :  { %v1851_v51 = vpop.f32.mrb[2].mxu1 }
 0x1d8   :  { %v804_v1 = vpop.f32.mrb[3].mxu1 }
 0x1db   :  { %v1948_v2 = vpop.f32.mrb[0].mxu0 }
 0x1dc   :  { %v2034_v3 = vadd.f32 %v1948_v2, %v1848_v0  ;;  %v1539_v7 = vpop.f32.mrb[1].mxu0 }
 0x1dd   :  { %v2035_v8 = vadd.f32 %v1539_v7, %v794_v52 }
 0x1de   :  { %1587 = vst [vmem:[%s2657_s5 + $0x8] sm:$0xff] %v2034_v3 }
 0x1df   :  { %1586 = vst [vmem:[%s2657_s5] sm:$0xff] %v2035_v8  ;;  %v1951_v9 = vpop.f32.mrb[2].mxu0 }
 0x1e0   :  { %v2036_v14 = vadd.f32 %v1951_v9, %v1851_v51  ;;  %v1549_v4 = vpop.f32.mrb[3].mxu0 }
 0x1e1   :  { %v2037_v15 = vadd.f32 %v1549_v4, %v804_v1 }
 0x1e2   :  { %1589 = vst [vmem:[%s2657_s5 + $0x18] sm:$0xff] %v2036_v14 }
 0x1e3   :  { %1588 = vst [vmem:[%s2657_s5 + $0x10] sm:$0xff] %v2037_v15  ;;  %v1874_v58 = vpop.f32.mrb[4].mxu1  ;;  %v1954_v12 = vpop.f32.mrb[4].mxu0 }
 0x1e4   :  { %v2038_v17 = vadd.f32 %v1954_v12, %v1874_v58  ;;  %v963_v13 = vpop.f32.mrb[5].mxu1  ;;  %v1559_v18 = vpop.f32.mrb[5].mxu0 }
 0x1e5   :  { %v2039_v16 = vadd.f32 %v1559_v18, %v963_v13 }
 0x1e6   :  { %1591 = vst [vmem:[%s2657_s5 + $0x28] sm:$0xff] %v2038_v17 }
 0x1e7   :  { %1590 = vst [vmem:[%s2657_s5 + $0x20] sm:$0xff] %v2039_v16  ;;  %v1877_v21 = vpop.f32.mrb[6].mxu1  ;;  %v1957_v26 = vpop.f32.mrb[6].mxu0 }
 0x1e8   :  { %v2040_v19 = vadd.f32 %v1957_v26, %v1877_v21  ;;  %v973_v27 = vpop.f32.mrb[7].mxu1  ;;  %v1569_v22 = vpop.f32.mrb[7].mxu0 }
 0x1e9   :  { %v2041_v28 = vadd.f32 %v1569_v22, %v973_v27 }
 0x1ea   :  { %1593 = vst [vmem:[%s2657_s5 + $0x38] sm:$0xff] %v2040_v19 }
 0x1eb   :  { %1592 = vst [vmem:[%s2657_s5 + $0x30] sm:$0xff] %v2041_v28 }

</bundles_post_ra>
